<compile_context>
chip_gen: v5e
topology: v5e:2x2
jax: 0.10.0
libtpu: 0.0.40
codegen_flags: <defaults>
</compile_context>

<pallas_src>
import jax
import jax.numpy as jnp
import numpy as np
from jax.experimental import pallas as pl
from jax.experimental.pallas import tpu as pltpu

LANE = 128
ROW_ALIGN = 32     # sublane alignment that is safe for f32 / bf16 / int8 tiles
MAX_TM = 2048      # 2048x128 f32 tile = 1 MiB; 3 arrays x 2 bufs = 6 MiB VMEM


def _iou_kernel(x_ref, t_ref, o_ref, acc_ref):
    phase = pl.program_id(0)   # 0: global reductions, 1: element-wise loss
    i = pl.program_id(1)       # tile index

    @pl.when((phase == 0) & (i == 0))
    def _init():
        acc_ref[0] = 0.0       # TP = sum(x * t)
        acc_ref[1] = 0.0       # S  = sum(x)

    @pl.when(phase == 0)
    def _reduce():
        x = x_ref[...].astype(jnp.float32)
        t = t_ref[...].astype(jnp.float32)
        acc_ref[0] += jnp.sum(x * t)
        acc_ref[1] += jnp.sum(x)

    @pl.when(phase == 1)
    def _elementwise():
        tp = acc_ref[0]
        s = acc_ref[1]
        fp = s - tp                              # scalar, as in torch
        t = t_ref[...].astype(jnp.float32)
        fn = t - s                               # element-wise (the torch bug)
        # Keep the exact op ordering of the torch forward (the fp/fn VPU ops
        # are free filler under the DMA, so no perf is lost by not
        # algebraically simplifying to tp / t).
        o_ref[...] = 1.0 - tp / (tp + fp + fn)


def iou_loss(inputs, targets, smooth=1):
    del smooth  # accepted but unused -- exactly like the PyTorch forward
    # TODO(synk): original forward does `print(TP)`; host-side print omitted.
    flat_x = inputs.reshape(-1)
    flat_t = targets.reshape(-1)
    n = flat_x.shape[0]

    rows = -(-n // LANE)                          # ceil(n / 128)
    rows = -(-rows // ROW_ALIGN) * ROW_ALIGN      # sublane-friendly row count
    tm = min(MAX_TM, rows)                        # biggest tile that fits VMEM
    rows = -(-rows // tm) * tm                    # pad to a whole number of tiles
    padded_n = rows * LANE
    if padded_n != n:
        pad = padded_n - n
        flat_x = jnp.pad(flat_x, (0, pad))        # zeros don't change TP or S
        flat_t = jnp.pad(flat_t, (0, pad))
    x2 = flat_x.reshape(rows, LANE)
    t2 = flat_t.reshape(rows, LANE)
    n_tiles = rows // tm

    loss2d = pl.pallas_call(
        _iou_kernel,
        out_shape=jax.ShapeDtypeStruct((rows, LANE), jnp.float32),
        grid_spec=pltpu.PrefetchScalarGridSpec(
            num_scalar_prefetch=0,
            grid=(2, n_tiles),
            in_specs=[
                # x is only needed in phase 0; pin block 0 during phase 1 so it
                # is not re-read from HBM.
                pl.BlockSpec((tm, LANE), lambda p, i: (i * (1 - p), 0)),
                # t is needed in both phases.
                pl.BlockSpec((tm, LANE), lambda p, i: (i, 0)),
            ],
            # Output stays on block 0 during phase 0 (never written there), and
            # walks the tiles in phase 1.
            out_specs=pl.BlockSpec((tm, LANE), lambda p, i: (i * p, 0)),
            scratch_shapes=[pltpu.SMEM((2,), jnp.float32)],
        ),
        compiler_params=pltpu.CompilerParams(
            dimension_semantics=("arbitrary", "arbitrary")),
    )(x2, t2)

    # Same flat (numel,) shape as the torch return (padding sliced off).
    return loss2d.reshape(-1)[:n]


def _reference(inputs, targets):
    x = inputs.reshape(-1).astype(jnp.float32)
    t = targets.reshape(-1).astype(jnp.float32)
    tp = jnp.sum(x * t)
    s = jnp.sum(x)
    fp = s - tp
    fn = t - s
    iou = tp / (tp + fp + fn)
    return 1.0 - iou


if __name__ == "__main__":
    key = jax.random.PRNGKey(0)
    k1, k2 = jax.random.split(key)
    # batch=2, channels=4, spatial=16x16 (NCHW, like the UNet outputs/masks).
    # The module's denominator TP+FP+FN algebraically equals `targets`
    # element-wise, i.e. it suffers catastrophic cancellation (and divides by
    # ~0 wherever targets == 0 -- the original bug).  To make the kernel-vs-
    # reference comparison deterministic, quantize the "probabilities" to
    # multiples of 1/256 so every partial sum is exactly representable in f32:
    # TP and S are then bit-identical in any reduction order, and both kernel
    # and reference produce identical values (including matching -inf).
    inputs = jnp.round(jax.random.uniform(k1, (2, 4, 16, 16)) * 256.0) / 256.0
    targets = (jax.random.uniform(k2, (2, 4, 16, 16)) > 0.5).astype(jnp.float32)

    out = iou_loss(inputs, targets)
    jax.block_until_ready(out)

    ref = _reference(inputs, targets)
    np.testing.assert_allclose(np.asarray(out), np.asarray(ref),
                               rtol=1e-6, atol=1e-6)

    print("KERNEL_OK")
</pallas_src>

<mosaic_0001>
module attributes {stable_mosaic.version = 11 : i64} {
  func.func @_iou_kernel(%arg0: i32, %arg1: i32, %arg2: memref<32x128xf32, #tpu.memory_space<vmem>>, %arg3: memref<32x128xf32, #tpu.memory_space<vmem>>, %arg4: memref<32x128xf32, #tpu.memory_space<vmem>>, %arg5: memref<2xf32, #tpu.memory_space<smem>>) attributes {dimension_semantics = [#tpu.dimension_semantics<arbitrary>, #tpu.dimension_semantics<arbitrary>], iteration_bounds = array<i64: 2, 1>, scalar_prefetch = 0 : i64, scratch_operands = 1 : i64, tpu.core_type = #tpu.core_type<tc>, window_params = [{transform_indices = @transform_0, window_bounds = array<i64: 32, 128>}, {transform_indices = @transform_1, window_bounds = array<i64: 32, 128>}, {transform_indices = @transform_2, window_bounds = array<i64: 32, 128>}]} {
    %c0_i32 = arith.constant 0 : i32
    %0 = arith.cmpi eq, %arg0, %c0_i32 : i32
    %c0_i32_0 = arith.constant 0 : i32
    %1 = arith.cmpi eq, %arg1, %c0_i32_0 : i32
    %2 = arith.andi %0, %1 : i1
    %3 = arith.extui %2 : i1 to i32
    %c0_i32_1 = arith.constant 0 : i32
    %4 = arith.cmpi ne, %3, %c0_i32_1 : i32
    scf.if %4 {
      %cst = arith.constant 0.000000e+00 : f32
      %c0 = arith.constant 0 : index
      %11 = memref.load %arg5[%c0] : memref<2xf32, #tpu.memory_space<smem>>
      memref.store %cst, %arg5[%c0] : memref<2xf32, #tpu.memory_space<smem>>
      %cst_5 = arith.constant 0.000000e+00 : f32
      %c1 = arith.constant 1 : index
      %12 = memref.load %arg5[%c1] : memref<2xf32, #tpu.memory_space<smem>>
      memref.store %cst_5, %arg5[%c1] : memref<2xf32, #tpu.memory_space<smem>>
    } else {
    }
    %c0_i32_2 = arith.constant 0 : i32
    %5 = arith.cmpi eq, %arg0, %c0_i32_2 : i32
    %6 = arith.extui %5 : i1 to i32
    %c0_i32_3 = arith.constant 0 : i32
    %7 = arith.cmpi ne, %6, %c0_i32_3 : i32
    scf.if %7 {
      %c0 = arith.constant 0 : index
      %c0_5 = arith.constant 0 : index
      %11 = vector.load %arg2[%c0, %c0_5] : memref<32x128xf32, #tpu.memory_space<vmem>>, vector<32x128xf32>
      %c0_6 = arith.constant 0 : index
      %c0_7 = arith.constant 0 : index
      %12 = vector.load %arg3[%c0_6, %c0_7] : memref<32x128xf32, #tpu.memory_space<vmem>>, vector<32x128xf32>
      %c0_8 = arith.constant 0 : index
      %13 = memref.load %arg5[%c0_8] : memref<2xf32, #tpu.memory_space<smem>>
      %14 = arith.mulf %11, %12 : vector<32x128xf32>
      %15 = vector.shape_cast %14 : vector<32x128xf32> to vector<1x32x128xf32>
      %cst = arith.constant dense<0.000000e+00> : vector<1xf32>
      %16 = vector.multi_reduction <add>, %15, %cst [1, 2] : vector<1x32x128xf32> to vector<1xf32>
      %17 = vector.shape_cast %16 : vector<1xf32> to vector<1x1x1xf32>
      %18 = vector.extract %17[0, 0, 0] : f32 from vector<1x1x1xf32>
      %19 = arith.addf %13, %18 : f32
      %c0_9 = arith.constant 0 : index
      %20 = memref.load %arg5[%c0_9] : memref<2xf32, #tpu.memory_space<smem>>
      memref.store %19, %arg5[%c0_9] : memref<2xf32, #tpu.memory_space<smem>>
      %c1 = arith.constant 1 : index
      %21 = memref.load %arg5[%c1] : memref<2xf32, #tpu.memory_space<smem>>
      %22 = vector.shape_cast %11 : vector<32x128xf32> to vector<1x32x128xf32>
      %cst_10 = arith.constant dense<0.000000e+00> : vector<1xf32>
      %23 = vector.multi_reduction <add>, %22, %cst_10 [1, 2] : vector<1x32x128xf32> to vector<1xf32>
      %24 = vector.shape_cast %23 : vector<1xf32> to vector<1x1x1xf32>
      %25 = vector.extract %24[0, 0, 0] : f32 from vector<1x1x1xf32>
      %26 = arith.addf %21, %25 : f32
      %c1_11 = arith.constant 1 : index
      %27 = memref.load %arg5[%c1_11] : memref<2xf32, #tpu.memory_space<smem>>
      memref.store %26, %arg5[%c1_11] : memref<2xf32, #tpu.memory_space<smem>>
    } else {
    }
    %c1_i32 = arith.constant 1 : i32
    %8 = arith.cmpi eq, %arg0, %c1_i32 : i32
    %9 = arith.extui %8 : i1 to i32
    %c0_i32_4 = arith.constant 0 : i32
    %10 = arith.cmpi ne, %9, %c0_i32_4 : i32
    scf.if %10 {
      %c0 = arith.constant 0 : index
      %11 = memref.load %arg5[%c0] : memref<2xf32, #tpu.memory_space<smem>>
      %c1 = arith.constant 1 : index
      %12 = memref.load %arg5[%c1] : memref<2xf32, #tpu.memory_space<smem>>
      %13 = arith.subf %12, %11 : f32
      %c0_5 = arith.constant 0 : index
      %c0_6 = arith.constant 0 : index
      %14 = vector.load %arg3[%c0_5, %c0_6] : memref<32x128xf32, #tpu.memory_space<vmem>>, vector<32x128xf32>
      %15 = vector.broadcast %12 : f32 to vector<32x128xf32>
      %16 = arith.subf %14, %15 : vector<32x128xf32>
      %17 = arith.addf %11, %13 : f32
      %18 = vector.broadcast %17 : f32 to vector<32x128xf32>
      %19 = arith.addf %18, %16 : vector<32x128xf32>
      %20 = vector.broadcast %11 : f32 to vector<32x128xf32>
      %21 = arith.divf %20, %19 : vector<32x128xf32>
      %cst = arith.constant 1.000000e+00 : f32
      %22 = vector.broadcast %cst : f32 to vector<32x128xf32>
      %23 = arith.subf %22, %21 : vector<32x128xf32>
      %c0_7 = arith.constant 0 : index
      %c0_8 = arith.constant 0 : index
      %24 = vector.load %arg4[%c0_7, %c0_8] : memref<32x128xf32, #tpu.memory_space<vmem>>, vector<32x128xf32>
      tpu.vector_store %arg4[%c0_7, %c0_8], %23 {strides = array<i32>} : memref<32x128xf32, #tpu.memory_space<vmem>>, vector<32x128xf32>,
    } else {
    }
    return
  }
  func.func @transform_0(%arg0: i32, %arg1: i32) -> (i32, i32) {
    %c1_i32 = arith.constant 1 : i32
    %0 = arith.subi %c1_i32, %arg0 : i32
    %1 = arith.muli %arg1, %0 : i32
    %c0_i32 = arith.constant 0 : i32
    %c0_i32_0 = arith.constant 0 : i32
    return %1, %c0_i32 : i32, i32
  }
  func.func @transform_1(%arg0: i32, %arg1: i32) -> (i32, i32) {
    %c0_i32 = arith.constant 0 : i32
    %c0_i32_0 = arith.constant 0 : i32
    return %arg1, %c0_i32 : i32, i32
  }
  func.func @transform_2(%arg0: i32, %arg1: i32) -> (i32, i32) {
    %0 = arith.muli %arg1, %arg0 : i32
    %c0_i32 = arith.constant 0 : i32
    %c0_i32_0 = arith.constant 0 : i32
    return %0, %c0_i32 : i32, i32
  }
}

</mosaic_0001>

<bundles_post_ra>
// kernel: tpu_custom_call.1
= control target key start
LH: loop header
LB: loop body
LE: loop exit
PB: predicated region body
PF: predicated region fallthrough
CT: control target
= control target key end

     0   :  { %7 = vsyncpa [#allocation4], 0  ;;  %s827_s0 = inlined_call_operand.hbm [shape: f32[32,128], index: 0, kind: input, shape index: {}]   ;;  %s828_s1 = inlined_call_operand.hbm [shape: f32[32,128], index: 1, kind: input, shape index: {}]   ;;  %s829_s2 = inlined_call_operand.hbm [shape: f32[32,128], index: 2, kind: output, shape index: {}]  }
   0x1   :  { %9 = vsyncpa [#allocation4 + $0x1], 0 }
   0x2   :  { %10 = vsyncpa [#allocation7], 0 }
   0x3   :  { %11 = vsyncpa [#allocation5], 0 }
   0x4   :  { %13 = vsyncpa [#allocation5 + $0x1], 0  ;;  %s717_s9 = smov 0   ;;  %s719_s10 = smov 0  }
   0x5   :  { %s721_s11 = smov 0  }
   0x6 LB: > { %s473_s12 = sadd.s32 4294967295, %s692_s11   ;;  %s474_s13 = sadd.s32 4294967294, %s692_s11   ;;  %s692_s11 = sphi %s721_s11, %s19_s11   ;;  %s688_s10 = sphi %s719_s10, %s841_s10   ;;  %s684_s9 = sphi %s717_s9, %s840_s9  }
   0x7   : > { %s31_s14 = sadd.s32 1, %s688_s10  ;;  %p475_p0 = scmp.ge.s32.totalorder %s692_s11, 1 }
   0x8   : > { %p33_p1 = scmp.ge.s32.totalorder %s31_s14, 2  ;;  %p120_p2 = scmp.lt.s32.totalorder %s692_s11, 3 }
   0x9   : > { %p739_p3 = scmp.eq.s32.totalorder %s473_s12, 0  ;;  %s134_s19 = sshll.u32 %s828_s1, 4  ;;  %s135_s19 = int_to_ptr.hbm [resolvable:$true] %s134_s19 }
   0xa   : > { %s843_s14 = smov (%p33_p1, %s31_s14), 0  ;;  %p745_p4 = pnand %p475_p0, %p120_p2 }
   0xb   : > { %s694_s20 = smov [#allocation6]   ;;  %p477_p7 = scmp.ge.s32.totalorder %s692_s11, 2 }
   0xc   : > { %p510_p5 = pneg %p745_p4  ;;  %s136_s21 = sshll.u32 %s694_s20, 4  ;;  %s137_s21 = int_to_ptr.vmem [resolvable:$true] %s136_s21 }
   0xd   : > { %p523_p8 = scmp.lt.s32.totalorder %s692_s11, 2  ;;  %s695_s22 = smov 128  }
   0xe   : > { %p511_p6 = pnand %p739_p3, %p510_p5  ;;  %s696_s23 = smov 8  }
   0xf   : > { %p524_p9 = scmp.eq.s32.totalorder %s692_s11, 0  ;;  %s162_s26 = sshll.u32 %s827_s0, 4  ;;  %s163_s26 = int_to_ptr.hbm [resolvable:$true] %s162_s26 }
  0x10   : > { %513 = dma.hbm_to_vmem [thread:$0]  (!%p511_p6), %s135_s19, 512, %s137_s21, [#allocation7], %s695_s22, %s695_s22, %s696_s23  }
  0x11   : > { %s697_s27 = smov [#allocation3]   ;;  %p515_p10 = pnand %p524_p9, %p523_p8 }
  0x12   : > { %s164_s28 = sshll.u32 %s697_s27, 4  ;;  %176 = sbr.rel (%p745_p4) target bundleno = 277 (0x115), region = 28  ;;  %s165_s28 = int_to_ptr.vmem [resolvable:$true] %s164_s28 }
  0x13   : > { %517 = dma.hbm_to_vmem [thread:$0]  (!%p515_p10), %s163_s26, 512, %s165_s28, [#allocation4], %s695_s22, %s695_s22, %s696_s23  }
  0x17   : > { %671 = dma.done.wait (%p739_p3), [#allocation4], 512  }
  0x18   : > { %673 = vsyncadd (%p739_p3), [#allocation4], 4294966784 }
  0x19   : > { %675 = dma.done.wait (%p739_p3), [#allocation7], 512  }
  0x1a   : > { %677 = vsyncadd (%p739_p3), [#allocation7], 4294966784  ;;  %p215_p11 = scmp.eq.s32.totalorder %s684_s9, 0  ;;  %s698_s29 = smov 0.0  }
  0x1b   : > { %p483_p12 = scmp.ne.s32.totalorder %s684_s9, 0 }
  0x1c   : > { %504 = sst [smem:[#allocation2]] (%p215_p11), %s698_s29 }
  0x1d   : > { %505 = sst [smem:[#allocation2 + $0x1]] (%p215_p11), %s698_s29  ;;  %227 = sbr.rel (%p483_p12) target bundleno = 233 (0xe9), region = 44 }
  0x1e   : > { %s236_s30 = sld [smem:[#allocation2]] (!%p483_p12) }
  0x1f   : > { %s484_s4 = sld [smem:[#allocation2 + $0x1]] (!%p483_p12) }
  0x22   : > { %v228_v0 = vld [vmem:[#allocation3] sm:$0xff]  ;;  %v229_v1 = vld [vmem:[#allocation3 + $0x8] sm:$0xff]  ;;  %v230_v2 = vld [vmem:[#allocation3 + $0x10] sm:$0xff] }
  0x23   : > { %v231_v3 = vld [vmem:[#allocation3 + $0x18] sm:$0xff]  ;;  %v232_v4 = vld [vmem:[#allocation6] sm:$0xff]  ;;  %v233_v5 = vld [vmem:[#allocation6 + $0x8] sm:$0xff]  ;;  %v257_v14 = vadd.f32 %v229_v1, %v228_v0 }
  0x24   : > { %v234_v6 = vld [vmem:[#allocation6 + $0x10] sm:$0xff]  ;;  %v235_v7 = vld [vmem:[#allocation6 + $0x18] sm:$0xff]  ;;  %v237_v8 = vmul.f32 %v232_v4, %v228_v0  ;;  %v238_v9 = vmul.f32 %v233_v5, %v229_v1 }
  0x25   : > { %v239_v10 = vmul.f32 %v234_v6, %v230_v2  ;;  %v240_v11 = vmul.f32 %v235_v7, %v231_v3  ;;  %v258_v16 = vadd.f32 %v257_v14, %v230_v2 }
  0x26   : > { %v241_v12 = vadd.f32 %v238_v9, %v237_v8 }
  0x27   : > { %v259_v17 = vadd.f32 %v258_v16, %v231_v3 }
  0x28   : > { %v242_v13 = vadd.f32 %v241_v12, %v239_v10 }
  0x2a   : > { %v243_v15 = vadd.f32 %v242_v13, %v240_v11 }
  0x2c   : > { %244 = vadd.xlane.f32.xlu0 %v243_v15 }
  0x34   : > { %260 = vadd.xlane.f32.xlu0 %v259_v17 }
  0x9f   : > { %v245_v18 = vpop.xlane.xlu0 %244 }
  0xa0   : > { %v246_v19 = vrot.slane %v245_v18, 4 }
  0xa2   : > { %v247_v20 = vadd.f32 %v246_v19, %v245_v18 }
  0xa4   : > { %v248_v21 = vrot.slane %v247_v20, 2 }
  0xa6   : > { %v249_v22 = vadd.f32 %v248_v21, %v247_v20 }
  0xa7   : > { %v261_v23 = vpop.xlane.xlu0 %260 }
  0xa8   : > { %v262_v24 = vrot.slane %v261_v23, 4  ;;  %v250_v25 = vrot.slane %v249_v22, 1 }
  0xaa   : > { %v263_v26 = vadd.f32 %v262_v24, %v261_v23  ;;  %v251_v27 = vadd.f32 %v250_v25, %v249_v22 }
  0xac   : > { %v264_v28 = vrot.slane %v263_v26, 2  ;;  %492 = vpush %v251_v27 }
  0xae   : > { %v265_v29 = vadd.f32 %v264_v28, %v263_v26 }
  0xb0   : > { %v266_v30 = vrot.slane %v265_v29, 1 }
  0xb2   : > { %v267_v31 = vadd.f32 %v266_v30, %v265_v29 }
  0xb4   : > { %494 = vpush %v267_v31 }
  0xdd   : > { %s493_s3 = spop %492 }
  0xde   : > { %s253_s5 = sadd.f32 %s493_s3, %s236_s30 }
  0xe0   : > { %255 = sst [smem:[#allocation2]] %s253_s5 }
  0xe5   : > { %s495_s6 = spop %494 }
  0xe6   : > { %s269_s7 = sadd.f32 %s495_s6, %s484_s4 }
  0xe8   : > { %271 = sst [smem:[#allocation2 + $0x1]] %s269_s7 }
  0xe9 PF: > { %p485_p13 = scmp.ne.s32.totalorder %s684_s9, 1 }
  0xea   : > { %s775_s8 = sld [smem:[#allocation2]] (!%p485_p13) }
  0xeb   : > { %275 = sbr.rel (%p485_p13) target bundleno = 273 (0x111), region = 48  ;;  %s486_s15 = sld [smem:[#allocation2 + $0x1]] (!%p485_p13) }
  0xf0   : > { %v279_v32 = vld [vmem:[#allocation6] sm:$0xff]  ;;  %v280_v33 = vld [vmem:[#allocation6 + $0x8] sm:$0xff]  ;;  %v281_v34 = vld [vmem:[#allocation6 + $0x10] sm:$0xff]  ;;  %v294_v11 = vstv %s775_s8 }
  0xf1   : > { %s278_s16 = ssub.f32 %s486_s15, %s775_s8  ;;  %v283_v35 = vstv %s486_s15  ;;  %v282_v36 = vld [vmem:[#allocation6 + $0x18] sm:$0xff] }
  0xf2   : > { %v284_v37 = vsub.f32 %v279_v32, %v283_v35  ;;  %v285_v38 = vsub.f32 %v280_v33, %v283_v35  ;;  %v286_v39 = vsub.f32 %v281_v34, %v283_v35  ;;  %v287_v40 = vsub.f32 %v282_v36, %v283_v35 }
  0xf3   : > { %s288_s17 = sadd.f32 %s278_s16, %s775_s8 }
  0xf5   : > { %v289_v41 = vstv %s288_s17 }
  0xf6   : > { %v290_v42 = vadd.f32 %v289_v41, %v284_v37  ;;  %v291_v43 = vadd.f32 %v289_v41, %v285_v38  ;;  %v292_v44 = vadd.f32 %v289_v41, %v286_v39  ;;  %v293_v45 = vadd.f32 %v289_v41, %v287_v40 }
  0xf8   : > { %562 = vrcp.f32 %v290_v42  ;;  %v304_v46 = vand.u32 2147483647, %v290_v42  ;;  %v306_v47 = vand.u32 2147483648, %v290_v42  ;;  %v321_v48 = vand.u32 2147483648, %v291_v43 }
  0xf9   : > { %564 = vrcp.f32 %v291_v43  ;;  %vm300_vm0 = vweird.f32 %v290_v42  ;;  %vm315_vm1 = vweird.f32 %v291_v43  ;;  %v319_v52 = vand.u32 2147483647, %v291_v43 }
  0xfa   : > { %566 = vrcp.f32 %v292_v44  ;;  %vm779_vm2 = vcmp.eq.f32.partialorder %v304_v46, 8.507059e+37  ;;  %v307_v55 = vor.u32 1.1754944e-38, %v306_v47  ;;  %vm330_vm3 = vweird.f32 %v292_v44 }
  0xfb   : > { %568 = vrcp.f32 %v293_v45  ;;  %v322_v58 = vor.u32 1.1754944e-38, %v321_v48  ;;  %v334_v62 = vand.u32 2147483647, %v292_v44  ;;  %v336_v63 = vand.u32 2147483648, %v292_v44 }
  0xfc   : > { %vm345_vm8 = vweird.f32 %v293_v45  ;;  %v349_v5 = vand.u32 2147483647, %v293_v45  ;;  %v351_v6 = vand.u32 2147483648, %v293_v45  ;;  %vm320_vm11 = vcmp.eq.f32.partialorder %v319_v52, 8.507059e+37 }
  0xfd   : > { %v337_v14 = vor.u32 1.1754944e-38, %v336_v63  ;;  %vm335_vm13 = vcmp.eq.f32.partialorder %v334_v62, 8.507059e+37 }
  0xfe   : > { %v563_v49 = vpop.eup %562  ;;  %vm350_vm15 = vcmp.eq.f32.partialorder %v349_v5, 8.507059e+37  ;;  %v352_v20 = vor.u32 1.1754944e-38, %v351_v6 }
  0xff   : > { %v565_v50 = vpop.eup %564  ;;  %v296_v51 = vmul.f32 %v563_v49, %v290_v42  ;;  %vm301_vm4 = vweird.f32 %v563_v49 }
 0x100   : > { %v567_v53 = vpop.eup %566  ;;  %v311_v56 = vmul.f32 %v565_v50, %v291_v43  ;;  %vm316_vm5 = vweird.f32 %v565_v50  ;;  %vm784_vm7 = vmor %vm300_vm0, %vm301_vm4 }
 0x101   : > { %v297_v57 = vsub.f32 1.0, %v296_v51  ;;  %v326_v59 = vmul.f32 %v567_v53, %v292_v44  ;;  %v569_v60 = vpop.eup %568  ;;  %vm331_vm6 = vweird.f32 %v567_v53  ;;  %vm789_vm9 = vmor %vm315_vm1, %vm316_vm5 }
 0x102   : > { %v312_v61 = vsub.f32 1.0, %v311_v56  ;;  %v341_v2 = vmul.f32 %v569_v60, %v293_v45  ;;  %vm346_vm10 = vweird.f32 %v569_v60  ;;  %vm796_vm12 = vmor %vm330_vm3, %vm331_vm6 }
 0x103   : > { %v298_v0 = vmul.f32 %v563_v49, %v297_v57  ;;  %v327_v1 = vsub.f32 1.0, %v326_v59  ;;  %vm347_vm14 = vmor %vm345_vm8, %vm346_vm10 }
 0x104   : > { %v313_v4 = vmul.f32 %v565_v50, %v312_v61  ;;  %v342_v10 = vsub.f32 1.0, %v341_v2 }
 0x105   : > { %v299_v7 = vadd.f32 %v563_v49, %v298_v0  ;;  %v328_v9 = vmul.f32 %v567_v53, %v327_v1 }
 0x106   : > { %v314_v12 = vadd.f32 %v565_v50, %v313_v4  ;;  %v343_v17 = vmul.f32 %v569_v60, %v342_v10 }
 0x107   : > { %v303_v15 = vsel %vm784_vm7, %v563_v49, %v299_v7  ;;  %v329_v16 = vadd.f32 %v567_v53, %v328_v9 }
 0x108   : > { %v308_v18 = vsel %vm779_vm2, %v307_v55, %v303_v15  ;;  %v318_v19 = vsel %vm789_vm9, %v565_v50, %v314_v12  ;;  %v344_v24 = vadd.f32 %v569_v60, %v343_v17 }
 0x109   : > { %v309_v21 = vmul.f32 %v308_v18, %v294_v11  ;;  %v323_v22 = vsel %vm320_vm11, %v322_v58, %v318_v19  ;;  %v333_v23 = vsel %vm796_vm12, %v567_v53, %v329_v16 }
 0x10a   : > { %v324_v25 = vmul.f32 %v323_v22, %v294_v11  ;;  %v338_v26 = vsel %vm335_vm13, %v337_v14, %v333_v23  ;;  %v348_v29 = vsel %vm347_vm14, %v569_v60, %v344_v24 }
 0x10b   : > { %v355_v27 = vsub.f32 1.0, %v309_v21  ;;  %v339_v28 = vmul.f32 %v338_v26, %v294_v11  ;;  %v353_v31 = vsel %vm350_vm15, %v352_v20, %v348_v29 }
 0x10c   : > { %v356_v30 = vsub.f32 1.0, %v324_v25  ;;  %v354_v33 = vmul.f32 %v353_v31, %v294_v11 }
 0x10d   : > { %359 = vst [vmem:[#allocation8] sm:$0xff] %v355_v27  ;;  %v357_v32 = vsub.f32 1.0, %v339_v28 }
 0x10e   : > { %360 = vst [vmem:[#allocation8 + $0x8] sm:$0xff] %v356_v30  ;;  %v358_v34 = vsub.f32 1.0, %v354_v33 }
 0x10f   : > { %361 = vst [vmem:[#allocation8 + $0x10] sm:$0xff] %v357_v32 }
 0x110   : > { %362 = vst [vmem:[#allocation8 + $0x18] sm:$0xff] %v358_v34 }
 0x111 PF: > { %p527_p0 = scmp.eq.s32.totalorder %s473_s12, 1  ;;  %s379_s19 = sshll.u32 %s829_s2, 4  ;;  %s380_s19 = int_to_ptr.hbm [resolvable:$true] %s379_s19 }
 0x112   : > { %s699_s20 = smov [#allocation8]   ;;  %s700_s22 = smov 128  }
 0x113   : > { %s377_s21 = sshll.u32 %s699_s20, 4  ;;  %s701_s23 = smov 8   ;;  %s378_s21 = int_to_ptr.vmem [resolvable:$true] %s377_s21 }
 0x114   : > { %507 = dma.vmem_to_hbm [thread:$0]  (%p527_p0), %s378_s21, 512, %s380_s19, [#allocation5], %s700_s22, %s700_s22, %s701_s23  }
 0x115 PF: > { %p529_p1 = scmp.eq.s32.totalorder %s474_s13, 1 }
 0x117   : > { %p519_p2 = pnand %p529_p1, %p477_p7 }
 0x119   : > { %p520_p3 = pneg %p519_p2 }
 0x11b   : > { %679 = dma.done.wait (%p520_p3), [#allocation5], 512  }
 0x11c   : > { %681 = vsyncadd (%p520_p3), [#allocation5], 4294966784  ;;  %s19_s11 = sadd.s32 1, %s692_s11   ;;  %s840_s9 = smov %s688_s10 }
 0x11d   : > { %p16_p4 = scmp.ge.s32.totalorder %s19_s11, 4   ;;  %s841_s10 = smov %s843_s14 }
 0x11f   :  { %18 = sbr.rel (!%p16_p4) target bundleno = 6 (0x6), region = 94 }
 0x124   :  { %401 = vsyncpa [#allocation4], 1 }
 0x125   :  { %403 = vsyncpa [#allocation4 + $0x1], 1 }
 0x126   :  { %404 = vsyncpa [#allocation7], 1 }
 0x127   :  { %405 = vsyncpa [#allocation5], 1 }
 0x128   :  { %407 = vsyncpa [#allocation5 + $0x1], 1 }

</bundles_post_ra>
